<compile_context>
chip_gen: v6e
topology: v6e:2x2x1
jax: 0.10.0
libtpu: 0.0.40
codegen_flags: <defaults>
</compile_context>

<pallas_src>
import functools
import math

import numpy as np

import jax
import jax.numpy as jnp
from jax.experimental import pallas as pl
from jax.experimental.pallas import tpu as pltpu


# Odd Taylor coefficients of sin(2*pi*r) in r, through r^15.  Max truncation
# error on r in [-0.5, 0.5] is ~1e-6 (next term ~ pi^17/17!), far inside the
# validation tolerance; all constants are baked into the kernel as f32.
_SINPI_COEFFS = tuple(
    (-1.0) ** k * (2.0 * math.pi) ** (2 * k + 1) / math.factorial(2 * k + 1)
    for k in range(8)
)


def _sin_2pi(t):
    """sin(2*pi*t) for arbitrary t: periodic range reduction + odd polynomial.

    Stays entirely on the VPU (floor, FMAs); no generic libm-style sin.
    """
    r = t - jnp.floor(t + 0.5)          # r in (-0.5, 0.5]
    r2 = r * r
    p = _SINPI_COEFFS[-1]
    for c in _SINPI_COEFFS[-2::-1]:      # Horner in r2
        p = p * r2 + c
    return r * p


def _pe_kernel(g_ref, coords_ref, out_ref):
    """One column-tile of the positional encoding, channel-first.

    g_ref:      (C, 2)      VMEM -- [Gx | Gy] columns of the gaussian matrix
    coords_ref: (2, tile)   VMEM -- row 0 = x coord, row 1 = y coord (in [-1,1])
    out_ref:    (2C, tile)  VMEM -- rows 0..C-1 = sin half, rows C..2C-1 = cos half
    """
    c = g_ref.shape[0]
    gx = g_ref[:, 0:1]                   # (C, 1)
    gy = g_ref[:, 1:2]                   # (C, 1)
    cx = coords_ref[0:1, :]              # (1, tile)
    cy = coords_ref[1:2, :]              # (1, tile)

    # Shared argument for both halves (coords @ G folded into two broadcast FMAs).
    t = gx * cx + gy * cy                # (C, tile)

    # sin half and cos half (cos(2*pi*t) == sin(2*pi*(t + 0.25))).
    out_ref[0:c, :] = _sin_2pi(t).astype(out_ref.dtype)
    out_ref[c:, :] = _sin_2pi(t + 0.25).astype(out_ref.dtype)


_MAX_TILE_BYTES = 8 << 20      # per output tile (double-buffered by the pipeline)
_SPLIT_BYTES = 2 << 20         # outputs bigger than this get >=2 (even) grid steps


def _round_up(x, m):
    return (x + m - 1) // m * m


def _plan_tiles(n, c2, itemsize):
    """Pick (tile_cols, num_steps) over the flattened h*w axis.

    tile_cols is always a multiple of 128 (lane-dense, unmasked stores) and the
    per-tile output stays <= _MAX_TILE_BYTES.  Step counts > 1 are forced even
    so v7x megacore gets a balanced split; small problems stay single-step.
    """
    col_bytes = c2 * itemsize
    max_cols = max(128, (_MAX_TILE_BYTES // col_bytes) // 128 * 128)
    n128 = _round_up(n, 128)

    if n128 <= max_cols:
        if n * col_bytes < _SPLIT_BYTES:
            return n128, 1               # small: one step, no overhead
        steps = 2                        # big enough to want both v7x TCs
    else:
        steps = pl.cdiv(n128, max_cols)
        if steps % 2:
            steps += 1                   # even step count for megacore balance

    tile = _round_up(pl.cdiv(n, steps), 128)
    return tile, steps


@functools.lru_cache(maxsize=None)
def _coords_for_size(h, w, n_pad):
    """Cached (2, n_pad) normalized coordinate grid for the flattened h*w plane."""
    ys = ((np.arange(h, dtype=np.float32) + 0.5) / h) * 2.0 - 1.0
    xs = ((np.arange(w, dtype=np.float32) + 0.5) / w) * 2.0 - 1.0
    coords = np.zeros((2, n_pad), dtype=np.float32)
    coords[0, : h * w] = np.tile(xs, h)          # x varies fastest (row-major)
    coords[1, : h * w] = np.repeat(ys, w)
    return jnp.asarray(coords)


def precompute_pe_params(gaussian_matrix):
    """(2, C) gaussian matrix -> (C, 2) kernel params. Do this once at model init."""
    return jnp.asarray(gaussian_matrix, jnp.float32).T


def position_embedding_from_params(params, size, *, out_dtype=jnp.float32):
    """Pallas equivalent of PositionEmbeddingRandom.forward(size).

    params:  (C, 2) float32, from precompute_pe_params(gaussian_matrix)
    size:    (h, w) python ints
    returns: (2*C, h, w) out_dtype
    """
    h, w = size
    c = params.shape[0]
    c2 = 2 * c
    n = h * w

    itemsize = jnp.dtype(out_dtype).itemsize
    tile, steps = _plan_tiles(n, c2, itemsize)
    n_pad = tile * steps
    coords = _coords_for_size(h, w, n_pad)

    # ~24 VPU flops per output element (shared argument + floor + Horner poly);
    # no EUP transcendentals are used.
    cost = pl.CostEstimate(
        flops=24 * c2 * n_pad,
        transcendentals=0,
        bytes_accessed=c2 * n_pad * itemsize + coords.size * 4 + params.size * 4,
    )

    pe_flat = pl.pallas_call(
        _pe_kernel,
        out_shape=jax.ShapeDtypeStruct((c2, n_pad), out_dtype),
        grid=(steps,),
        in_specs=[
            pl.BlockSpec((c, 2), lambda i: (0, 0)),       # params: VMEM-resident
            pl.BlockSpec((2, tile), lambda i: (0, i)),    # stacked x/y coord tile
        ],
        out_specs=pl.BlockSpec((c2, tile), lambda i: (0, i)),
        compiler_params=pltpu.CompilerParams(
            dimension_semantics=("parallel",),
            vmem_limit_bytes=32 * 1024 * 1024,
        ),
        cost_estimate=cost,
    )(params, coords)

    # Drop column padding (no-op when n_pad == n) and reshape channel-first
    # (layout-preserving; no transpose / HBM round trip).
    return pe_flat[:, :n].reshape(c2, h, w)


def position_embedding_random(gaussian_matrix, size, *, out_dtype=jnp.float32):
    """Convenience wrapper taking the raw (2, C) gaussian matrix."""
    return position_embedding_from_params(
        precompute_pe_params(gaussian_matrix), size, out_dtype=out_dtype
    )


def _reference(gaussian_matrix, size):
    """Pure-JAX reference mirroring the PyTorch forward exactly."""
    h, w = size
    grid = jnp.ones((h, w), jnp.float32)
    y_embed = (jnp.cumsum(grid, axis=0) - 0.5) / h
    x_embed = (jnp.cumsum(grid, axis=1) - 0.5) / w
    coords = jnp.stack([x_embed, y_embed], axis=-1)          # (h, w, 2)
    coords = 2.0 * coords - 1.0
    coords = coords @ gaussian_matrix                        # (h, w, C)
    coords = 2.0 * jnp.pi * coords
    pe = jnp.concatenate([jnp.sin(coords), jnp.cos(coords)], axis=-1)
    return jnp.transpose(pe, (2, 0, 1))                      # (2C, h, w)


if __name__ == "__main__":
    num_pos_feats = 64
    scale = 1.0

    key = jax.random.PRNGKey(0)
    gaussian_matrix = scale * jax.random.normal(
        key, (2, num_pos_feats), dtype=jnp.float32
    )
    params = precompute_pe_params(gaussian_matrix)

    # Main case (matches the small-shape spirit of the FaceXFormer pe_layer call).
    h, w = 16, 16
    pe = jax.block_until_ready(position_embedding_from_params(params, (h, w)))
    ref = _reference(gaussian_matrix, (h, w))
    assert pe.shape == (2 * num_pos_feats, h, w), pe.shape
    assert pe.dtype == jnp.float32
    assert jnp.allclose(pe, ref, atol=1e-4, rtol=1e-5), "mismatch vs reference (16x16)"

    # Ragged case: h*w not a multiple of 128 -> exercises the padded-column path.
    h2, w2 = 7, 9
    pe2 = jax.block_until_ready(position_embedding_from_params(params, (h2, w2)))
    ref2 = _reference(gaussian_matrix, (h2, w2))
    assert pe2.shape == (2 * num_pos_feats, h2, w2), pe2.shape
    assert jnp.allclose(pe2, ref2, atol=1e-4, rtol=1e-5), "mismatch vs reference (7x9)"

    print("KERNEL_OK")
</pallas_src>

<mosaic_0001>
module attributes {stable_mosaic.version = 11 : i64} {
  func.func @_pe_kernel(%arg0: i32, %arg1: memref<64x2xf32, #tpu.memory_space<vmem>>, %arg2: memref<2x256xf32, #tpu.memory_space<vmem>>, %arg3: memref<128x256xf32, #tpu.memory_space<vmem>>) attributes {dimension_semantics = [#tpu.dimension_semantics<parallel>], iteration_bounds = array<i64: 1>, scalar_prefetch = 0 : i64, scratch_operands = 0 : i64, tpu.core_type = #tpu.core_type<tc>, window_params = [{pipeline_mode = #tpu.pipeline_mode<synchronous>, transform_indices = @transform_0, window_bounds = array<i64: 64, 2>}, {transform_indices = @transform_1, window_bounds = array<i64: 2, 256>}, {transform_indices = @transform_2, window_bounds = array<i64: 128, 256>}]} {
    %c0 = arith.constant 0 : index
    %c0_0 = arith.constant 0 : index
    %0 = vector.load %arg1[%c0, %c0_0] : memref<64x2xf32, #tpu.memory_space<vmem>>, vector<64x1xf32>
    %c0_1 = arith.constant 0 : index
    %c1 = arith.constant 1 : index
    %1 = vector.load %arg1[%c0_1, %c1] : memref<64x2xf32, #tpu.memory_space<vmem>>, vector<64x1xf32>
    %c0_2 = arith.constant 0 : index
    %c0_3 = arith.constant 0 : index
    %2 = vector.load %arg2[%c0_2, %c0_3] : memref<2x256xf32, #tpu.memory_space<vmem>>, vector<1x256xf32>
    %c1_4 = arith.constant 1 : index
    %c0_5 = arith.constant 0 : index
    %3 = vector.load %arg2[%c1_4, %c0_5] : memref<2x256xf32, #tpu.memory_space<vmem>>, vector<1x256xf32>
    %4 = vector.broadcast %0 : vector<64x1xf32> to vector<64x256xf32>
    %5 = vector.broadcast %2 : vector<1x256xf32> to vector<64x256xf32>
    %6 = arith.mulf %4, %5 : vector<64x256xf32>
    %7 = vector.broadcast %1 : vector<64x1xf32> to vector<64x256xf32>
    %8 = vector.broadcast %3 : vector<1x256xf32> to vector<64x256xf32>
    %9 = arith.mulf %7, %8 : vector<64x256xf32>
    %10 = arith.addf %6, %9 : vector<64x256xf32>
    %cst = arith.constant 5.000000e-01 : f32
    %11 = vector.broadcast %cst : f32 to vector<64x256xf32>
    %12 = arith.addf %10, %11 : vector<64x256xf32>
    %13 = math.floor %12 : vector<64x256xf32>
    %14 = arith.subf %10, %13 : vector<64x256xf32>
    %15 = arith.mulf %14, %14 : vector<64x256xf32>
    %cst_6 = arith.constant -0.718122303 : f32
    %16 = vector.broadcast %cst_6 : f32 to vector<64x256xf32>
    %17 = arith.mulf %16, %15 : vector<64x256xf32>
    %cst_7 = arith.constant 3.81995249 : f32
    %18 = vector.broadcast %cst_7 : f32 to vector<64x256xf32>
    %19 = arith.addf %17, %18 : vector<64x256xf32>
    %20 = arith.mulf %19, %15 : vector<64x256xf32>
    %cst_8 = arith.constant -15.0946426 : f32
    %21 = vector.broadcast %cst_8 : f32 to vector<64x256xf32>
    %22 = arith.addf %20, %21 : vector<64x256xf32>
    %23 = arith.mulf %22, %15 : vector<64x256xf32>
    %cst_9 = arith.constant 42.0586929 : f32
    %24 = vector.broadcast %cst_9 : f32 to vector<64x256xf32>
    %25 = arith.addf %23, %24 : vector<64x256xf32>
    %26 = arith.mulf %25, %15 : vector<64x256xf32>
    %cst_10 = arith.constant -76.7058563 : f32
    %27 = vector.broadcast %cst_10 : f32 to vector<64x256xf32>
    %28 = arith.addf %26, %27 : vector<64x256xf32>
    %29 = arith.mulf %28, %15 : vector<64x256xf32>
    %cst_11 = arith.constant 81.6052475 : f32
    %30 = vector.broadcast %cst_11 : f32 to vector<64x256xf32>
    %31 = arith.addf %29, %30 : vector<64x256xf32>
    %32 = arith.mulf %31, %15 : vector<64x256xf32>
    %cst_12 = arith.constant -4.134170e+01 : f32
    %33 = vector.broadcast %cst_12 : f32 to vector<64x256xf32>
    %34 = arith.addf %32, %33 : vector<64x256xf32>
    %35 = arith.mulf %34, %15 : vector<64x256xf32>
    %cst_13 = arith.constant 6.28318548 : f32
    %36 = vector.broadcast %cst_13 : f32 to vector<64x256xf32>
    %37 = arith.addf %35, %36 : vector<64x256xf32>
    %38 = arith.mulf %14, %37 : vector<64x256xf32>
    %c0_14 = arith.constant 0 : index
    %c0_15 = arith.constant 0 : index
    %39 = vector.load %arg3[%c0_14, %c0_15] : memref<128x256xf32, #tpu.memory_space<vmem>>, vector<64x256xf32>
    tpu.vector_store %arg3[%c0_14, %c0_15], %38 {strides = array<i32>} : memref<128x256xf32, #tpu.memory_space<vmem>>, vector<64x256xf32>,
    %cst_16 = arith.constant 2.500000e-01 : f32
    %40 = vector.broadcast %cst_16 : f32 to vector<64x256xf32>
    %41 = arith.addf %10, %40 : vector<64x256xf32>
    %cst_17 = arith.constant 5.000000e-01 : f32
    %42 = vector.broadcast %cst_17 : f32 to vector<64x256xf32>
    %43 = arith.addf %41, %42 : vector<64x256xf32>
    %44 = math.floor %43 : vector<64x256xf32>
    %45 = arith.subf %41, %44 : vector<64x256xf32>
    %46 = arith.mulf %45, %45 : vector<64x256xf32>
    %cst_18 = arith.constant -0.718122303 : f32
    %47 = vector.broadcast %cst_18 : f32 to vector<64x256xf32>
    %48 = arith.mulf %47, %46 : vector<64x256xf32>
    %cst_19 = arith.constant 3.81995249 : f32
    %49 = vector.broadcast %cst_19 : f32 to vector<64x256xf32>
    %50 = arith.addf %48, %49 : vector<64x256xf32>
    %51 = arith.mulf %50, %46 : vector<64x256xf32>
    %cst_20 = arith.constant -15.0946426 : f32
    %52 = vector.broadcast %cst_20 : f32 to vector<64x256xf32>
    %53 = arith.addf %51, %52 : vector<64x256xf32>
    %54 = arith.mulf %53, %46 : vector<64x256xf32>
    %cst_21 = arith.constant 42.0586929 : f32
    %55 = vector.broadcast %cst_21 : f32 to vector<64x256xf32>
    %56 = arith.addf %54, %55 : vector<64x256xf32>
    %57 = arith.mulf %56, %46 : vector<64x256xf32>
    %cst_22 = arith.constant -76.7058563 : f32
    %58 = vector.broadcast %cst_22 : f32 to vector<64x256xf32>
    %59 = arith.addf %57, %58 : vector<64x256xf32>
    %60 = arith.mulf %59, %46 : vector<64x256xf32>
    %cst_23 = arith.constant 81.6052475 : f32
    %61 = vector.broadcast %cst_23 : f32 to vector<64x256xf32>
    %62 = arith.addf %60, %61 : vector<64x256xf32>
    %63 = arith.mulf %62, %46 : vector<64x256xf32>
    %cst_24 = arith.constant -4.134170e+01 : f32
    %64 = vector.broadcast %cst_24 : f32 to vector<64x256xf32>
    %65 = arith.addf %63, %64 : vector<64x256xf32>
    %66 = arith.mulf %65, %46 : vector<64x256xf32>
    %cst_25 = arith.constant 6.28318548 : f32
    %67 = vector.broadcast %cst_25 : f32 to vector<64x256xf32>
    %68 = arith.addf %66, %67 : vector<64x256xf32>
    %69 = arith.mulf %45, %68 : vector<64x256xf32>
    %c64 = arith.constant 64 : index
    %c0_26 = arith.constant 0 : index
    %70 = vector.load %arg3[%c64, %c0_26] : memref<128x256xf32, #tpu.memory_space<vmem>>, vector<64x256xf32>
    tpu.vector_store %arg3[%c64, %c0_26], %69 {strides = array<i32>} : memref<128x256xf32, #tpu.memory_space<vmem>>, vector<64x256xf32>,
    return
  }
  func.func @transform_0(%arg0: i32) -> (i32, i32) {
    %c0_i32 = arith.constant 0 : i32
    %c0_i32_0 = arith.constant 0 : i32
    %c0_i32_1 = arith.constant 0 : i32
    return %c0_i32, %c0_i32_0 : i32, i32
  }
  func.func @transform_1(%arg0: i32) -> (i32, i32) {
    %c0_i32 = arith.constant 0 : i32
    %c0_i32_0 = arith.constant 0 : i32
    return %c0_i32, %arg0 : i32, i32
  }
  func.func @transform_2(%arg0: i32) -> (i32, i32) {
    %c0_i32 = arith.constant 0 : i32
    %c0_i32_0 = arith.constant 0 : i32
    return %c0_i32, %arg0 : i32, i32
  }
}

</mosaic_0001>

<bundles_post_ra>
// kernel: tpu_custom_call.1
= control target key start
LH: loop header
LB: loop body
LE: loop exit
PB: predicated region body
PF: predicated region fallthrough
CT: control target
= control target key end

     0   :  { %v869_v2 = vmov 0   ;;  %s1450_s0 = inlined_call_operand.vmem [shape: f32[64,2], index: 0, kind: input, shape index: {}]   ;;  %s1451_s1 = inlined_call_operand.vmem [shape: f32[2,256], index: 1, kind: input, shape index: {}]   ;;  %s1452_s2 = inlined_call_operand.hbm [shape: f32[128,256], index: 2, kind: output, shape index: {}]  }
   0x1   :  { %v14_v0 = vld [vmem:[%s1450_s0 + $0x10] sm:$0xff]  ;;  %v12_v1 = vld [vmem:[%s1450_s0] sm:$0xff]  ;;  %844 = vset.pattern.permute.xlu1 %v869_v2  ;;  %843 = vset.pattern.permute.xlu0 %v869_v2  ;;  %v15_v3 = vld [vmem:[%s1450_s0 + $0x18] sm:$0xff] }
   0x2   :  { %35 = vperm.xlu1 %844, %v14_v0   ;;  %25 = vperm.xlu0 %843, %v12_v1   ;;  %v13_v4 = vld [vmem:[%s1450_s0 + $0x8] sm:$0xff] }
   0x3   :  { %7 = vsyncpa [#allocation3], 0  ;;  %v17_v5 = vld [vmem:[%s1450_s0 + $0x28] sm:$0xff]  ;;  %v16_v6 = vld [vmem:[%s1450_s0 + $0x20] sm:$0xff]  ;;  %v870_v9 = vmov 1   ;;  %v64_v10 = vlaneseq }
   0x4   :  { %v19_v7 = vld [vmem:[%s1450_s0 + $0x38] sm:$0xff]  ;;  %v18_v8 = vld [vmem:[%s1450_s0 + $0x30] sm:$0xff]  ;;  %v20_v16 = vld [vmem:[%s1451_s1] ss:$2 sm:$0x3] }
   0x5   :  { %v65_v11 = vshrl.u32 %v64_v10, 7  ;;  %v837_v27 = vld [vmem:[%s1451_s1 + $0x1] ss:$2 sm:$0x3]  ;;  %s871_s1 = smov [#allocation2]  }
   0x6   :  { %40 = vperm.xlu1 %844, %v15_v3   ;;  %30 = vperm.xlu0 %843, %v13_v4   ;;  %s826_s28 = sshll.u32 %s871_s1, 4  ;;  %s827_s28 = int_to_ptr.vmem [resolvable:$true] %s826_s28 }
   0x7   :  { %v66_v14 = vsub.s32 0, %v65_v11  ;;  %v70_v15 = vsub.s32 1, %v65_v11  ;;  %s847_s29 = scalar_lea.vmem %s827_s28, 4096  ;;  %p852_p1 = scmp.lt.s32.totalorder %s827_s28, %s827_s28 }
   0x8   :  { %p848_p0 = scmp.ne.s32.totalorder %s827_s28, %s847_s29  ;;  %p853_p2 = scmp.lt.s32.totalorder %s847_s29, %s847_s29 }
   0x9   :  { %v67_v19 = vrot.slane %v20_v16, %v66_v14  ;;  %v71_v20 = vrot.slane %v20_v16, %v70_v15  ;;  %v935_v34 = vrot.slane %v837_v27, %v66_v14  ;;  %v937_v35 = vrot.slane %v837_v27, %v70_v15 }
   0xa   :  { %50 = vperm.xlu1 %844, %v17_v5   ;;  %45 = vperm.xlu0 %843, %v16_v6   ;;  %p854_p3 = por %p853_p2, %p852_p1 }
   0xc   :  { %p855_p4 = pnand %p854_p3, %p848_p0 }
   0xe   :  { %60 = vperm.xlu1 %844, %v19_v7   ;;  %55 = vperm.xlu0 %843, %v18_v8  }
  0x12   :  { %846 = vset.pattern.permute.xlu1 %v870_v9  ;;  %845 = vset.pattern.permute.xlu0 %v870_v9 }
  0x13   :  { %95 = vperm.xlu1 %846, %v13_v4   ;;  %91 = vperm.xlu0 %845, %v12_v1  }
  0x17   :  { %99 = vperm.xlu1 %846, %v14_v0   ;;  %103 = vperm.xlu0 %845, %v15_v3  }
  0x1b   :  { %107 = vperm.xlu1 %846, %v16_v6   ;;  %111 = vperm.xlu0 %845, %v17_v5  }
  0x1f   :  { %115 = vperm.xlu1 %846, %v18_v8   ;;  %119 = vperm.xlu0 %845, %v19_v7  }
  0x7d   :  { %v36_v12 = vpop.permute.xlu1 %35  ;;  %v26_v13 = vpop.permute.xlu0 %25 }
  0x7e   :  { %v74_v36 = vmul.f32 %v67_v19, %v26_v13  ;;  %v75_v37 = vmul.f32 %v71_v20, %v26_v13  ;;  %v943_v50 = vmul.f32 %v67_v19, %v36_v12  ;;  %v945_v51 = vmul.f32 %v71_v20, %v36_v12 }
  0x81   :  { %v41_v17 = vpop.permute.xlu1 %40  ;;  %v31_v18 = vpop.permute.xlu0 %30 }
  0x82   :  { %v76_v38 = vmul.f32 %v67_v19, %v31_v18  ;;  %v77_v39 = vmul.f32 %v71_v20, %v31_v18  ;;  %v947_v52 = vmul.f32 %v67_v19, %v41_v17  ;;  %v949_v53 = vmul.f32 %v71_v20, %v41_v17 }
  0x85   :  { %v51_v21 = vpop.permute.xlu1 %50  ;;  %v46_v22 = vpop.permute.xlu0 %45 }
  0x86   :  { %v916_v23 = vmul.f32 %v67_v19, %v51_v21  ;;  %v918_v24 = vmul.f32 %v71_v20, %v51_v21  ;;  %v920_v25 = vmul.f32 %v67_v19, %v46_v22  ;;  %v922_v26 = vmul.f32 %v71_v20, %v46_v22 }
  0x89   :  { %v61_v28 = vpop.permute.xlu1 %60  ;;  %v56_v29 = vpop.permute.xlu0 %55 }
  0x8a   :  { %v927_v30 = vmul.f32 %v67_v19, %v61_v28  ;;  %v929_v31 = vmul.f32 %v71_v20, %v61_v28  ;;  %v931_v32 = vmul.f32 %v67_v19, %v56_v29  ;;  %v933_v33 = vmul.f32 %v71_v20, %v56_v29 }
  0x8e   :  { %v96_v40 = vpop.permute.xlu1 %95  ;;  %v92_v41 = vpop.permute.xlu0 %91 }
  0x8f   :  { %v135_v42 = vmul.f32 %v935_v34, %v96_v40  ;;  %v136_v43 = vmul.f32 %v937_v35, %v96_v40  ;;  %v133_v44 = vmul.f32 %v935_v34, %v92_v41  ;;  %v134_v45 = vmul.f32 %v937_v35, %v92_v41 }
  0x91   :  { %v151_v46 = vadd.f32 %v135_v42, %v76_v38  ;;  %v152_v47 = vadd.f32 %v136_v43, %v77_v39  ;;  %v149_v48 = vadd.f32 %v133_v44, %v74_v36  ;;  %v150_v49 = vadd.f32 %v134_v45, %v75_v37 }
  0x92   :  { %v100_v22 = vpop.permute.xlu1 %99 }
  0x93   :  { %v167_v54 = vadd.f32 0.5, %v151_v46  ;;  %v168_v55 = vadd.f32 0.5, %v152_v47  ;;  %v487_v56 = vadd.f32 0.25, %v151_v46  ;;  %v488_v57 = vadd.f32 0.25, %v152_v47 }
  0x94   :  { %v165_v58 = vadd.f32 0.5, %v149_v48  ;;  %v166_v59 = vadd.f32 0.5, %v150_v49  ;;  %v485_v60 = vadd.f32 0.25, %v149_v48  ;;  %v486_v61 = vadd.f32 0.25, %v150_v49 }
  0x95   :  { %v183_v62 = vfloor.f32 %v167_v54  ;;  %v184_v63 = vfloor.f32 %v168_v55  ;;  %v503_v0 = vadd.f32 0.5, %v487_v56  ;;  %v504_v1 = vadd.f32 0.5, %v488_v57 }
  0x96   :  { %v181_v2 = vfloor.f32 %v165_v58  ;;  %v182_v3 = vfloor.f32 %v166_v59  ;;  %v501_v4 = vadd.f32 0.5, %v485_v60  ;;  %v502_v5 = vadd.f32 0.5, %v486_v61 }
  0x97   :  { %v951_v6 = vsub.f32 %v151_v46, %v183_v62  ;;  %v953_v7 = vsub.f32 %v152_v47, %v184_v63  ;;  %v519_v8 = vfloor.f32 %v503_v0  ;;  %v520_v9 = vfloor.f32 %v504_v1 }
  0x98   :  { %v955_v10 = vsub.f32 %v149_v48, %v181_v2  ;;  %v957_v11 = vsub.f32 %v150_v49, %v182_v3  ;;  %v517_v12 = vfloor.f32 %v501_v4  ;;  %v518_v13 = vfloor.f32 %v502_v5 }
  0x99   :  { %v961_v14 = vmul.f32 %v951_v6, %v951_v6  ;;  %v965_v15 = vmul.f32 %v953_v7, %v953_v7  ;;  %v967_v16 = vsub.f32 %v487_v56, %v519_v8  ;;  %v969_v17 = vsub.f32 %v488_v57, %v520_v9 }
  0x9a   :  { %v973_v18 = vmul.f32 %v955_v10, %v955_v10  ;;  %v977_v19 = vmul.f32 %v957_v11, %v957_v11  ;;  %v979_v20 = vsub.f32 %v485_v60, %v517_v12  ;;  %v981_v21 = vsub.f32 %v486_v61, %v518_v13 }
  0x9b   :  { %v231_v27 = vmul.f32 -0.7181223, %v961_v14  ;;  %v232_v28 = vmul.f32 -0.7181223, %v965_v15  ;;  %v987_v29 = vmul.f32 %v967_v16, %v967_v16  ;;  %v991_v36 = vmul.f32 %v969_v17, %v969_v17 }
  0x9c   :  { %v229_v37 = vmul.f32 -0.7181223, %v973_v18  ;;  %v230_v38 = vmul.f32 -0.7181223, %v977_v19  ;;  %v997_v39 = vmul.f32 %v979_v20, %v979_v20  ;;  %v1001_v40 = vmul.f32 %v981_v21, %v981_v21 }
  0x9d   :  { %v247_v41 = vadd.f32 3.8199525, %v231_v27  ;;  %v248_v42 = vadd.f32 3.8199525, %v232_v28  ;;  %v567_v43 = vmul.f32 -0.7181223, %v987_v29  ;;  %v1005_v44 = vmul.f32 %v935_v34, %v100_v22 }
  0x9e   :  { %v568_v45 = vmul.f32 -0.7181223, %v991_v36  ;;  %v245_v46 = vadd.f32 3.8199525, %v229_v37  ;;  %v246_v47 = vadd.f32 3.8199525, %v230_v38  ;;  %v1009_v48 = vmul.f32 %v937_v35, %v100_v22 }
  0x9f   :  { %v263_v49 = vmul.f32 %v247_v41, %v961_v14  ;;  %v264_v54 = vmul.f32 %v248_v42, %v965_v15  ;;  %v583_v55 = vadd.f32 3.8199525, %v567_v43  ;;  %v565_v56 = vmul.f32 -0.7181223, %v997_v39 }
  0xa0   :  { %v584_v57 = vadd.f32 3.8199525, %v568_v45  ;;  %v261_v58 = vmul.f32 %v245_v46, %v973_v18  ;;  %v262_v59 = vmul.f32 %v246_v47, %v977_v19  ;;  %v566_v60 = vmul.f32 -0.7181223, %v1001_v40 }
  0xa1   :  { %v279_v61 = vadd.f32 -15.094643, %v263_v49  ;;  %v280_v62 = vadd.f32 -15.094643, %v264_v54  ;;  %v599_v63 = vmul.f32 %v583_v55, %v987_v29  ;;  %v581_v0 = vadd.f32 3.8199525, %v565_v56 }
  0xa2   :  { %v600_v1 = vmul.f32 %v584_v57, %v991_v36  ;;  %v277_v2 = vadd.f32 -15.094643, %v261_v58  ;;  %v278_v3 = vadd.f32 -15.094643, %v262_v59  ;;  %v582_v4 = vadd.f32 3.8199525, %v566_v60 }
  0xa3   :  { %v295_v5 = vmul.f32 %v279_v61, %v961_v14  ;;  %v296_v8 = vmul.f32 %v280_v62, %v965_v15  ;;  %v615_v9 = vadd.f32 -15.094643, %v599_v63  ;;  %v597_v12 = vmul.f32 %v581_v0, %v997_v39 }
  0xa4   :  { %v616_v13 = vadd.f32 -15.094643, %v600_v1  ;;  %v293_v22 = vmul.f32 %v277_v2, %v973_v18  ;;  %v294_v27 = vmul.f32 %v278_v3, %v977_v19  ;;  %v598_v28 = vmul.f32 %v582_v4, %v1001_v40 }
  0xa5   :  { %v311_v37 = vadd.f32 42.058693, %v295_v5  ;;  %v312_v38 = vadd.f32 42.058693, %v296_v8  ;;  %v631_v41 = vmul.f32 %v615_v9, %v987_v29  ;;  %v613_v42 = vadd.f32 -15.094643, %v597_v12 }
  0xa6   :  { %v632_v43 = vmul.f32 %v616_v13, %v991_v36  ;;  %v309_v45 = vadd.f32 42.058693, %v293_v22  ;;  %v310_v46 = vadd.f32 42.058693, %v294_v27  ;;  %v614_v47 = vadd.f32 -15.094643, %v598_v28 }
  0xa7   :  { %v327_v49 = vmul.f32 %v311_v37, %v961_v14  ;;  %v328_v54 = vmul.f32 %v312_v38, %v965_v15  ;;  %v647_v55 = vadd.f32 42.058693, %v631_v41  ;;  %v629_v56 = vmul.f32 %v613_v42, %v997_v39 }
  0xa8   :  { %v648_v57 = vadd.f32 42.058693, %v632_v43  ;;  %v325_v58 = vmul.f32 %v309_v45, %v973_v18  ;;  %v326_v59 = vmul.f32 %v310_v46, %v977_v19  ;;  %v630_v60 = vmul.f32 %v614_v47, %v1001_v40 }
  0xa9   :  { %v343_v61 = vadd.f32 -76.70586, %v327_v49  ;;  %v344_v62 = vadd.f32 -76.70586, %v328_v54  ;;  %v663_v63 = vmul.f32 %v647_v55, %v987_v29  ;;  %v645_v0 = vadd.f32 42.058693, %v629_v56 }
  0xaa   :  { %v664_v1 = vmul.f32 %v648_v57, %v991_v36  ;;  %v341_v2 = vadd.f32 -76.70586, %v325_v58  ;;  %v342_v3 = vadd.f32 -76.70586, %v326_v59  ;;  %v646_v4 = vadd.f32 42.058693, %v630_v60 }
  0xab   :  { %v359_v5 = vmul.f32 %v343_v61, %v961_v14  ;;  %v360_v8 = vmul.f32 %v344_v62, %v965_v15  ;;  %v679_v9 = vadd.f32 -76.70586, %v663_v63  ;;  %v661_v12 = vmul.f32 %v645_v0, %v997_v39 }
  0xac   :  { %v680_v13 = vadd.f32 -76.70586, %v664_v1  ;;  %v357_v22 = vmul.f32 %v341_v2, %v973_v18  ;;  %v358_v27 = vmul.f32 %v342_v3, %v977_v19  ;;  %v662_v28 = vmul.f32 %v646_v4, %v1001_v40 }
  0xad   :  { %v375_v37 = vadd.f32 81.60525, %v359_v5  ;;  %v376_v38 = vadd.f32 81.60525, %v360_v8  ;;  %v695_v41 = vmul.f32 %v679_v9, %v987_v29  ;;  %v677_v42 = vadd.f32 -76.70586, %v661_v12 }
  0xae   :  { %v696_v43 = vmul.f32 %v680_v13, %v991_v36  ;;  %v373_v45 = vadd.f32 81.60525, %v357_v22  ;;  %v374_v46 = vadd.f32 81.60525, %v358_v27  ;;  %v678_v47 = vadd.f32 -76.70586, %v662_v28 }
  0xaf   :  { %v391_v49 = vmul.f32 %v375_v37, %v961_v14  ;;  %v392_v54 = vmul.f32 %v376_v38, %v965_v15  ;;  %v711_v55 = vadd.f32 81.60525, %v695_v41  ;;  %v693_v56 = vmul.f32 %v677_v42, %v997_v39 }
  0xb0   :  { %v712_v57 = vadd.f32 81.60525, %v696_v43  ;;  %v389_v58 = vmul.f32 %v373_v45, %v973_v18  ;;  %v390_v59 = vmul.f32 %v374_v46, %v977_v19  ;;  %v694_v60 = vmul.f32 %v678_v47, %v1001_v40 }
  0xb1   :  { %v407_v61 = vadd.f32 -41.3417, %v391_v49  ;;  %v408_v62 = vadd.f32 -41.3417, %v392_v54  ;;  %v727_v63 = vmul.f32 %v711_v55, %v987_v29  ;;  %v709_v0 = vadd.f32 81.60525, %v693_v56 }
  0xb2   :  { %v728_v1 = vmul.f32 %v712_v57, %v991_v36  ;;  %v405_v2 = vadd.f32 -41.3417, %v389_v58  ;;  %v406_v3 = vadd.f32 -41.3417, %v390_v59  ;;  %v710_v4 = vadd.f32 81.60525, %v694_v60  ;;  %v108_v58 = vpop.permute.xlu1 %107 }
  0xb3   :  { %v423_v5 = vmul.f32 %v407_v61, %v961_v14  ;;  %v424_v8 = vmul.f32 %v408_v62, %v965_v15  ;;  %v743_v9 = vadd.f32 -41.3417, %v727_v63  ;;  %v725_v12 = vmul.f32 %v709_v0, %v997_v39 }
  0xb4   :  { %v744_v13 = vadd.f32 -41.3417, %v728_v1  ;;  %v421_v22 = vmul.f32 %v405_v2, %v973_v18  ;;  %v422_v27 = vmul.f32 %v406_v3, %v977_v19  ;;  %v726_v28 = vmul.f32 %v710_v4, %v1001_v40  ;;  %v104_v19 = vpop.permute.xlu0 %103 }
  0xb5   :  { %v439_v37 = vadd.f32 6.2831855, %v423_v5  ;;  %v440_v38 = vadd.f32 6.2831855, %v424_v8  ;;  %v759_v41 = vmul.f32 %v743_v9, %v987_v29  ;;  %v741_v42 = vadd.f32 -41.3417, %v725_v12 }
  0xb6   :  { %v760_v43 = vmul.f32 %v744_v13, %v991_v36  ;;  %v437_v14 = vadd.f32 6.2831855, %v421_v22  ;;  %v438_v45 = vadd.f32 6.2831855, %v422_v27  ;;  %v742_v15 = vadd.f32 -41.3417, %v726_v28 }
  0xb7   :  { %v455_v46 = vmul.f32 %v439_v37, %v951_v6  ;;  %v456_v47 = vmul.f32 %v440_v38, %v953_v7  ;;  %v775_v49 = vadd.f32 6.2831855, %v759_v41  ;;  %v757_v18 = vmul.f32 %v741_v42, %v997_v39 }
  0xb8   :  { %v776_v54 = vadd.f32 6.2831855, %v760_v43  ;;  %v453_v55 = vmul.f32 %v437_v14, %v955_v10  ;;  %v454_v56 = vmul.f32 %v438_v45, %v957_v11  ;;  %v758_v29 = vmul.f32 %v742_v15, %v1001_v40 }
  0xb9   :  { %471 = vst [vmem:[#allocation2 + $0x10] sm:$0xff] %v455_v46  ;;  %472 = vst [vmem:[#allocation2 + $0x18] sm:$0xff] %v456_v47  ;;  %v791_v36 = vmul.f32 %v775_v49, %v967_v16  ;;  %v773_v57 = vadd.f32 6.2831855, %v757_v18  ;;  %v153_v6 = vadd.f32 %v1005_v44, %v943_v50  ;;  %v154_v7 = vadd.f32 %v1009_v48, %v945_v51 }
  0xba   :  { %v792_v39 = vmul.f32 %v776_v54, %v969_v17  ;;  %469 = vst [vmem:[#allocation2] sm:$0xff] %v453_v55  ;;  %470 = vst [vmem:[#allocation2 + $0x8] sm:$0xff] %v454_v56  ;;  %v774_v10 = vadd.f32 6.2831855, %v758_v29  ;;  %v139_v11 = vmul.f32 %v935_v34, %v104_v19  ;;  %v140_v40 = vmul.f32 %v937_v35, %v104_v19 }
  0xbb   :  { %807 = vst [vmem:[#allocation2 + $0x90] sm:$0xff] %v791_v36  ;;  %v789_v16 = vmul.f32 %v773_v57, %v979_v20  ;;  %v169_v59 = vadd.f32 0.5, %v153_v6  ;;  %v170_v60 = vadd.f32 0.5, %v154_v7  ;;  %v489_v61 = vadd.f32 0.25, %v153_v6 }
  0xbc   :  { %808 = vst [vmem:[#allocation2 + $0x98] sm:$0xff] %v792_v39  ;;  %v790_v50 = vmul.f32 %v774_v10, %v981_v21  ;;  %v490_v51 = vadd.f32 0.25, %v154_v7  ;;  %v155_v17 = vadd.f32 %v139_v11, %v947_v52  ;;  %v156_v44 = vadd.f32 %v140_v40, %v949_v53 }
  0xbd   :  { %805 = vst [vmem:[#allocation2 + $0x80] sm:$0xff] %v789_v16  ;;  %v185_v48 = vfloor.f32 %v169_v59  ;;  %v186_v62 = vfloor.f32 %v170_v60  ;;  %v505_v63 = vadd.f32 0.5, %v489_v61  ;;  %v141_v0 = vmul.f32 %v935_v34, %v108_v58 }
  0xbe   :  { %806 = vst [vmem:[#allocation2 + $0x88] sm:$0xff] %v790_v50  ;;  %v506_v1 = vadd.f32 0.5, %v490_v51  ;;  %v171_v20 = vadd.f32 0.5, %v155_v17  ;;  %v172_v2 = vadd.f32 0.5, %v156_v44  ;;  %v491_v3 = vadd.f32 0.25, %v155_v17 }
  0xbf   :  { %v1078_v4 = vsub.f32 %v153_v6, %v185_v48  ;;  %v1080_v5 = vsub.f32 %v154_v7, %v186_v62  ;;  %v521_v21 = vfloor.f32 %v505_v63  ;;  %v492_v8 = vadd.f32 0.25, %v156_v44 }
  0xc0   :  { %v522_v52 = vfloor.f32 %v506_v1  ;;  %v187_v9 = vfloor.f32 %v171_v20  ;;  %v188_v53 = vfloor.f32 %v172_v2  ;;  %v507_v12 = vadd.f32 0.5, %v491_v3 }
  0xc1   :  { %v1084_v13 = vmul.f32 %v1078_v4, %v1078_v4  ;;  %v1088_v22 = vmul.f32 %v1080_v5, %v1080_v5  ;;  %v1090_v27 = vsub.f32 %v489_v61, %v521_v21  ;;  %v508_v28 = vadd.f32 0.5, %v492_v8 }
  0xc2   :  { %v1092_v37 = vsub.f32 %v490_v51, %v522_v52  ;;  %v1094_v38 = vsub.f32 %v155_v17, %v187_v9  ;;  %v1096_v41 = vsub.f32 %v156_v44, %v188_v53  ;;  %v523_v42 = vfloor.f32 %v507_v12 }
  0xc3   :  { %v233_v43 = vmul.f32 -0.7181223, %v1084_v13  ;;  %v234_v14 = vmul.f32 -0.7181223, %v1088_v22  ;;  %v1102_v45 = vmul.f32 %v1090_v27, %v1090_v27  ;;  %v524_v15 = vfloor.f32 %v508_v28 }
  0xc4   :  { %v1106_v46 = vmul.f32 %v1092_v37, %v1092_v37  ;;  %v1110_v47 = vmul.f32 %v1094_v38, %v1094_v38  ;;  %v1114_v49 = vmul.f32 %v1096_v41, %v1096_v41  ;;  %v1116_v18 = vsub.f32 %v491_v3, %v523_v42 }
  0xc5   :  { %v249_v19 = vadd.f32 3.8199525, %v233_v43  ;;  %v250_v54 = vadd.f32 3.8199525, %v234_v14  ;;  %v569_v55 = vmul.f32 -0.7181223, %v1102_v45  ;;  %v1119_v56 = vsub.f32 %v492_v8, %v524_v15 }
  0xc6   :  { %v570_v29 = vmul.f32 -0.7181223, %v1106_v46  ;;  %v235_v36 = vmul.f32 -0.7181223, %v1110_v47  ;;  %v236_v57 = vmul.f32 -0.7181223, %v1114_v49  ;;  %v1126_v6 = vmul.f32 %v1116_v18, %v1116_v18 }
  0xc7   :  { %v265_v7 = vmul.f32 %v249_v19, %v1084_v13  ;;  %v266_v39 = vmul.f32 %v250_v54, %v1088_v22  ;;  %v585_v10 = vadd.f32 3.8199525, %v569_v55  ;;  %v1132_v11 = vmul.f32 %v1119_v56, %v1119_v56 }
  0xc8   :  { %v586_v40 = vadd.f32 3.8199525, %v570_v29  ;;  %v251_v16 = vadd.f32 3.8199525, %v235_v36  ;;  %v252_v59 = vadd.f32 3.8199525, %v236_v57  ;;  %v142_v60 = vmul.f32 %v937_v35, %v108_v58 }
  0xc9   :  { %v281_v61 = vadd.f32 -15.094643, %v265_v7  ;;  %v282_v50 = vadd.f32 -15.094643, %v266_v39  ;;  %v601_v51 = vmul.f32 %v585_v10, %v1102_v45  ;;  %v571_v17 = vmul.f32 -0.7181223, %v1126_v6 }
  0xca   :  { %v602_v44 = vmul.f32 %v586_v40, %v1106_v46  ;;  %v267_v48 = vmul.f32 %v251_v16, %v1110_v47  ;;  %v268_v62 = vmul.f32 %v252_v59, %v1114_v49  ;;  %v572_v63 = vmul.f32 -0.7181223, %v1132_v11 }
  0xcb   :  { %v297_v1 = vmul.f32 %v281_v61, %v1084_v13  ;;  %v298_v20 = vmul.f32 %v282_v50, %v1088_v22  ;;  %v617_v2 = vadd.f32 -15.094643, %v601_v51  ;;  %v587_v58 = vadd.f32 3.8199525, %v571_v17 }
  0xcc   :  { %v618_v3 = vadd.f32 -15.094643, %v602_v44  ;;  %v283_v21 = vadd.f32 -15.094643, %v267_v48  ;;  %v284_v8 = vadd.f32 -15.094643, %v268_v62  ;;  %v1144_v52 = vadd.f32 %v141_v0, %v920_v25 }
  0xcd   :  { %v313_v9 = vadd.f32 42.058693, %v297_v1  ;;  %v314_v53 = vadd.f32 42.058693, %v298_v20  ;;  %v633_v12 = vmul.f32 %v617_v2, %v1102_v45  ;;  %v588_v28 = vadd.f32 3.8199525, %v572_v63 }
  0xce   :  { %v634_v42 = vmul.f32 %v618_v3, %v1106_v46  ;;  %v299_v43 = vmul.f32 %v283_v21, %v1110_v47  ;;  %v300_v14 = vmul.f32 %v284_v8, %v1114_v49  ;;  %v603_v15 = vmul.f32 %v587_v58, %v1126_v6 }
  0xcf   :  { %v329_v19 = vmul.f32 %v313_v9, %v1084_v13  ;;  %v330_v54 = vmul.f32 %v314_v53, %v1088_v22  ;;  %v649_v55 = vadd.f32 42.058693, %v633_v12  ;;  %v604_v25 = vmul.f32 %v588_v28, %v1132_v11 }
  0xd0   :  { %v650_v0 = vadd.f32 42.058693, %v634_v42  ;;  %v315_v29 = vadd.f32 42.058693, %v299_v43  ;;  %v316_v36 = vadd.f32 42.058693, %v300_v14  ;;  %v1155_v57 = vadd.f32 %v142_v60, %v922_v26 }
  0xd1   :  { %v345_v7 = vadd.f32 -76.70586, %v329_v19  ;;  %v346_v39 = vadd.f32 -76.70586, %v330_v54  ;;  %v665_v10 = vmul.f32 %v649_v55, %v1102_v45  ;;  %v619_v40 = vadd.f32 -15.094643, %v603_v15 }
  0xd2   :  { %v666_v16 = vmul.f32 %v650_v0, %v1106_v46  ;;  %v331_v59 = vmul.f32 %v315_v29, %v1110_v47  ;;  %v332_v61 = vmul.f32 %v316_v36, %v1114_v49  ;;  %v620_v50 = vadd.f32 -15.094643, %v604_v25 }
  0xd3   :  { %v361_v51 = vmul.f32 %v345_v7, %v1084_v13  ;;  %v362_v17 = vmul.f32 %v346_v39, %v1088_v22  ;;  %v681_v44 = vadd.f32 -76.70586, %v665_v10  ;;  %v635_v26 = vmul.f32 %v619_v40, %v1126_v6 }
  0xd4   :  { %v682_v60 = vadd.f32 -76.70586, %v666_v16  ;;  %v347_v48 = vadd.f32 -76.70586, %v331_v59  ;;  %v348_v62 = vadd.f32 -76.70586, %v332_v61  ;;  %v636_v63 = vmul.f32 %v620_v50, %v1132_v11 }
  0xd5   :  { %v377_v1 = vadd.f32 81.60525, %v361_v51  ;;  %v378_v20 = vadd.f32 81.60525, %v362_v17  ;;  %v697_v2 = vmul.f32 %v681_v44, %v1102_v45  ;;  %v651_v58 = vadd.f32 42.058693, %v635_v26 }
  0xd6   :  { %v698_v3 = vmul.f32 %v682_v60, %v1106_v46  ;;  %v363_v21 = vmul.f32 %v347_v48, %v1110_v47  ;;  %v364_v8 = vmul.f32 %v348_v62, %v1114_v49  ;;  %v652_v9 = vadd.f32 42.058693, %v636_v63 }
  0xd7   :  { %v393_v53 = vmul.f32 %v377_v1, %v1084_v13  ;;  %v394_v12 = vmul.f32 %v378_v20, %v1088_v22  ;;  %v713_v28 = vadd.f32 81.60525, %v697_v2  ;;  %v667_v42 = vmul.f32 %v651_v58, %v1126_v6 }
  0xd8   :  { %v714_v43 = vadd.f32 81.60525, %v698_v3  ;;  %v379_v14 = vadd.f32 81.60525, %v363_v21  ;;  %v380_v15 = vadd.f32 81.60525, %v364_v8  ;;  %v668_v19 = vmul.f32 %v652_v9, %v1132_v11 }
  0xd9   :  { %v409_v54 = vadd.f32 -41.3417, %v393_v53  ;;  %v410_v55 = vadd.f32 -41.3417, %v394_v12  ;;  %v729_v25 = vmul.f32 %v713_v28, %v1102_v45  ;;  %v683_v0 = vadd.f32 -76.70586, %v667_v42 }
  0xda   :  { %v730_v29 = vmul.f32 %v714_v43, %v1106_v46  ;;  %v395_v36 = vmul.f32 %v379_v14, %v1110_v47  ;;  %v396_v7 = vmul.f32 %v380_v15, %v1114_v49  ;;  %v684_v39 = vadd.f32 -76.70586, %v668_v19 }
  0xdb   :  { %v425_v10 = vmul.f32 %v409_v54, %v1084_v13  ;;  %v426_v40 = vmul.f32 %v410_v55, %v1088_v22  ;;  %v745_v16 = vadd.f32 -41.3417, %v729_v25  ;;  %v699_v59 = vmul.f32 %v683_v0, %v1126_v6 }
  0xdc   :  { %v746_v61 = vadd.f32 -41.3417, %v730_v29  ;;  %v411_v50 = vadd.f32 -41.3417, %v395_v36  ;;  %v412_v51 = vadd.f32 -41.3417, %v396_v7  ;;  %v700_v17 = vmul.f32 %v684_v39, %v1132_v11 }
  0xdd   :  { %v441_v44 = vadd.f32 6.2831855, %v425_v10  ;;  %v442_v26 = vadd.f32 6.2831855, %v426_v40  ;;  %v761_v60 = vmul.f32 %v745_v16, %v1102_v45  ;;  %v715_v48 = vadd.f32 81.60525, %v699_v59 }
  0xde   :  { %v762_v62 = vmul.f32 %v746_v61, %v1106_v46  ;;  %v427_v63 = vmul.f32 %v411_v50, %v1110_v47  ;;  %v428_v13 = vmul.f32 %v412_v51, %v1114_v49  ;;  %v716_v22 = vadd.f32 81.60525, %v700_v17 }
  0xdf   :  { %v457_v1 = vmul.f32 %v441_v44, %v1078_v4  ;;  %v458_v20 = vmul.f32 %v442_v26, %v1080_v5  ;;  %v777_v2 = vadd.f32 6.2831855, %v761_v60  ;;  %v731_v58 = vmul.f32 %v715_v48, %v1126_v6  ;;  %v112_v4 = vpop.permute.xlu0 %111 }
  0xe0   :  { %v778_v3 = vadd.f32 6.2831855, %v762_v62  ;;  %v443_v21 = vadd.f32 6.2831855, %v427_v63  ;;  %v444_v8 = vadd.f32 6.2831855, %v428_v13  ;;  %v732_v45 = vmul.f32 %v716_v22, %v1132_v11 }
  0xe1   :  { %473 = vst [vmem:[#allocation2 + $0x20] sm:$0xff] %v457_v1  ;;  %474 = vst [vmem:[#allocation2 + $0x28] sm:$0xff] %v458_v20  ;;  %v793_v46 = vmul.f32 %v777_v2, %v1090_v27  ;;  %v747_v47 = vadd.f32 -41.3417, %v731_v58  ;;  %v173_v49 = vadd.f32 0.5, %v1144_v52  ;;  %v174_v9 = vadd.f32 0.5, %v1155_v57 }
  0xe2   :  { %v794_v5 = vmul.f32 %v778_v3, %v1092_v37  ;;  %v459_v53 = vmul.f32 %v443_v21, %v1094_v38  ;;  %v460_v12 = vmul.f32 %v444_v8, %v1096_v41  ;;  %v748_v28 = vadd.f32 -41.3417, %v732_v45 }
  0xe3   :  { %809 = vst [vmem:[#allocation2 + $0xa0] sm:$0xff] %v793_v46  ;;  %v763_v42 = vmul.f32 %v747_v47, %v1126_v6  ;;  %v189_v43 = vfloor.f32 %v173_v49  ;;  %v190_v14 = vfloor.f32 %v174_v9  ;;  %v493_v27 = vadd.f32 0.25, %v1144_v52 }
  0xe4   :  { %810 = vst [vmem:[#allocation2 + $0xa8] sm:$0xff] %v794_v5  ;;  %475 = vst [vmem:[#allocation2 + $0x30] sm:$0xff] %v459_v53  ;;  %v764_v15 = vmul.f32 %v748_v28, %v1132_v11  ;;  %v494_v19 = vadd.f32 0.25, %v1155_v57  ;;  %v143_v37 = vmul.f32 %v935_v34, %v112_v4  ;;  %v144_v38 = vmul.f32 %v937_v35, %v112_v4 }
  0xe5   :  { %476 = vst [vmem:[#allocation2 + $0x38] sm:$0xff] %v460_v12  ;;  %v779_v41 = vadd.f32 6.2831855, %v763_v42  ;;  %v1202_v54 = vsub.f32 %v1144_v52, %v189_v43  ;;  %v1205_v6 = vsub.f32 %v1155_v57, %v190_v14  ;;  %v509_v55 = vadd.f32 0.5, %v493_v27  ;;  %v116_v12 = vpop.permute.xlu1 %115 }
  0xe6   :  { %v780_v25 = vadd.f32 6.2831855, %v764_v15  ;;  %v510_v0 = vadd.f32 0.5, %v494_v19  ;;  %v159_v29 = vadd.f32 %v143_v37, %v916_v23  ;;  %v160_v11 = vadd.f32 %v144_v38, %v918_v24 }
  0xe7   :  { %v795_v36 = vmul.f32 %v779_v41, %v1116_v18  ;;  %v1212_v7 = vmul.f32 %v1202_v54, %v1202_v54  ;;  %v1216_v52 = vmul.f32 %v1205_v6, %v1205_v6  ;;  %v525_v39 = vfloor.f32 %v509_v55 }
  0xe8   :  { %v796_v57 = vmul.f32 %v780_v25, %v1119_v56  ;;  %v526_v10 = vfloor.f32 %v510_v0  ;;  %v175_v40 = vadd.f32 0.5, %v159_v29  ;;  %v176_v16 = vadd.f32 0.5, %v160_v11 }
  0xe9   :  { %811 = vst [vmem:[#allocation2 + $0xb0] sm:$0xff] %v795_v36  ;;  %v237_v23 = vmul.f32 -0.7181223, %v1212_v7  ;;  %v238_v24 = vmul.f32 -0.7181223, %v1216_v52  ;;  %v1221_v18 = vsub.f32 %v493_v27, %v525_v39  ;;  %v495_v59 = vadd.f32 0.25, %v159_v29 }
  0xea   :  { %812 = vst [vmem:[#allocation2 + $0xb8] sm:$0xff] %v796_v57  ;;  %v1223_v61 = vsub.f32 %v494_v19, %v526_v10  ;;  %v191_v50 = vfloor.f32 %v175_v40  ;;  %v192_v51 = vfloor.f32 %v176_v16  ;;  %v496_v17 = vadd.f32 0.25, %v160_v11 }
  0xeb   :  { %v253_v44 = vadd.f32 3.8199525, %v237_v23  ;;  %v254_v26 = vadd.f32 3.8199525, %v238_v24  ;;  %v1227_v56 = vmul.f32 %v1221_v18, %v1221_v18  ;;  %v511_v60 = vadd.f32 0.5, %v495_v59 }
  0xec   :  { %v1231_v48 = vmul.f32 %v1223_v61, %v1223_v61  ;;  %v1233_v62 = vsub.f32 %v159_v29, %v191_v50  ;;  %v1235_v63 = vsub.f32 %v160_v11, %v192_v51  ;;  %v512_v13 = vadd.f32 0.5, %v496_v17 }
  0xed   :  { %v269_v22 = vmul.f32 %v253_v44, %v1212_v7  ;;  %v270_v1 = vmul.f32 %v254_v26, %v1216_v52  ;;  %v573_v20 = vmul.f32 -0.7181223, %v1227_v56  ;;  %v527_v2 = vfloor.f32 %v511_v60 }
  0xee   :  { %v574_v58 = vmul.f32 -0.7181223, %v1231_v48  ;;  %v1243_v3 = vmul.f32 %v1233_v62, %v1233_v62  ;;  %v1247_v21 = vmul.f32 %v1235_v63, %v1235_v63  ;;  %v528_v8 = vfloor.f32 %v512_v13 }
  0xef   :  { %v285_v45 = vadd.f32 -15.094643, %v269_v22  ;;  %v286_v46 = vadd.f32 -15.094643, %v270_v1  ;;  %v589_v47 = vadd.f32 3.8199525, %v573_v20  ;;  %v1249_v49 = vsub.f32 %v495_v59, %v527_v2 }
  0xf0   :  { %v590_v9 = vadd.f32 3.8199525, %v574_v58  ;;  %v239_v4 = vmul.f32 -0.7181223, %v1243_v3  ;;  %v240_v5 = vmul.f32 -0.7181223, %v1247_v21  ;;  %v1253_v53 = vsub.f32 %v496_v17, %v528_v8 }
  0xf1   :  { %v301_v28 = vmul.f32 %v285_v45, %v1212_v7  ;;  %v302_v42 = vmul.f32 %v286_v46, %v1216_v52  ;;  %v605_v43 = vmul.f32 %v589_v47, %v1227_v56  ;;  %v1260_v14 = vmul.f32 %v1249_v49, %v1249_v49 }
  0xf2   :  { %v606_v27 = vmul.f32 %v590_v9, %v1231_v48  ;;  %v255_v15 = vadd.f32 3.8199525, %v239_v4  ;;  %v256_v19 = vadd.f32 3.8199525, %v240_v5  ;;  %v1265_v37 = vmul.f32 %v1253_v53, %v1253_v53 }
  0xf3   :  { %v317_v38 = vadd.f32 42.058693, %v301_v28  ;;  %v318_v41 = vadd.f32 42.058693, %v302_v42  ;;  %v621_v55 = vadd.f32 -15.094643, %v605_v43  ;;  %v145_v25 = vmul.f32 %v935_v34, %v116_v12 }
  0xf4   :  { %v622_v0 = vadd.f32 -15.094643, %v606_v27  ;;  %v271_v29 = vmul.f32 %v255_v15, %v1243_v3  ;;  %v272_v11 = vmul.f32 %v256_v19, %v1247_v21  ;;  %v575_v36 = vmul.f32 -0.7181223, %v1260_v14 }
  0xf5   :  { %v333_v39 = vmul.f32 %v317_v38, %v1212_v7  ;;  %v334_v57 = vmul.f32 %v318_v41, %v1216_v52  ;;  %v637_v10 = vmul.f32 %v621_v55, %v1227_v56  ;;  %v576_v40 = vmul.f32 -0.7181223, %v1265_v37 }
  0xf6   :  { %v638_v16 = vmul.f32 %v622_v0, %v1231_v48  ;;  %v287_v23 = vadd.f32 -15.094643, %v271_v29  ;;  %v288_v24 = vadd.f32 -15.094643, %v272_v11  ;;  %v591_v59 = vadd.f32 3.8199525, %v575_v36 }
  0xf7   :  { %v349_v50 = vadd.f32 -76.70586, %v333_v39  ;;  %v350_v51 = vadd.f32 -76.70586, %v334_v57  ;;  %v653_v17 = vadd.f32 42.058693, %v637_v10  ;;  %v1277_v44 = vmul.f32 %v937_v35, %v116_v12 }
  0xf8   :  { %v654_v26 = vadd.f32 42.058693, %v638_v16  ;;  %v303_v60 = vmul.f32 %v287_v23, %v1243_v3  ;;  %v304_v13 = vmul.f32 %v288_v24, %v1247_v21  ;;  %v592_v22 = vadd.f32 3.8199525, %v576_v40 }
  0xf9   :  { %v365_v1 = vmul.f32 %v349_v50, %v1212_v7  ;;  %v366_v20 = vmul.f32 %v350_v51, %v1216_v52  ;;  %v669_v2 = vmul.f32 %v653_v17, %v1227_v56  ;;  %v607_v58 = vmul.f32 %v591_v59, %v1260_v14 }
  0xfa   :  { %v670_v8 = vmul.f32 %v654_v26, %v1231_v48  ;;  %v319_v45 = vadd.f32 42.058693, %v303_v60  ;;  %v320_v46 = vadd.f32 42.058693, %v304_v13  ;;  %v608_v47 = vmul.f32 %v592_v22, %v1265_v37 }
  0xfb   :  { %v381_v9 = vadd.f32 81.60525, %v365_v1  ;;  %v382_v4 = vadd.f32 81.60525, %v366_v20  ;;  %v685_v5 = vadd.f32 -76.70586, %v669_v2  ;;  %v1288_v12 = vadd.f32 %v145_v25, %v931_v32 }
  0xfc   :  { %v686_v28 = vadd.f32 -76.70586, %v670_v8  ;;  %v335_v42 = vmul.f32 %v319_v45, %v1243_v3  ;;  %v336_v43 = vmul.f32 %v320_v46, %v1247_v21  ;;  %v623_v27 = vadd.f32 -15.094643, %v607_v58 }
  0xfd   :  { %v397_v15 = vmul.f32 %v381_v9, %v1212_v7  ;;  %v398_v19 = vmul.f32 %v382_v4, %v1216_v52  ;;  %v701_v38 = vmul.f32 %v685_v5, %v1227_v56  ;;  %v624_v41 = vadd.f32 -15.094643, %v608_v47 }
  0xfe   :  { %v702_v55 = vmul.f32 %v686_v28, %v1231_v48  ;;  %v351_v0 = vadd.f32 -76.70586, %v335_v42  ;;  %v352_v29 = vadd.f32 -76.70586, %v336_v43  ;;  %v639_v32 = vmul.f32 %v623_v27, %v1260_v14 }
  0xff   :  { %v413_v25 = vadd.f32 -41.3417, %v397_v15  ;;  %v414_v11 = vadd.f32 -41.3417, %v398_v19  ;;  %v717_v36 = vadd.f32 81.60525, %v701_v38  ;;  %v640_v39 = vmul.f32 %v624_v41, %v1265_v37 }
 0x100   :  { %v718_v57 = vadd.f32 81.60525, %v702_v55  ;;  %v367_v10 = vmul.f32 %v351_v0, %v1243_v3  ;;  %v368_v40 = vmul.f32 %v352_v29, %v1247_v21  ;;  %v655_v16 = vadd.f32 42.058693, %v639_v32 }
 0x101   :  { %v429_v23 = vmul.f32 %v413_v25, %v1212_v7  ;;  %v430_v24 = vmul.f32 %v414_v11, %v1216_v52  ;;  %v733_v59 = vmul.f32 %v717_v36, %v1227_v56  ;;  %v656_v50 = vadd.f32 42.058693, %v640_v39  ;;  %v120_v11 = vpop.permute.xlu0 %119 }
 0x102   :  { %v734_v51 = vmul.f32 %v718_v57, %v1231_v48  ;;  %v383_v17 = vadd.f32 81.60525, %v367_v10  ;;  %v384_v26 = vadd.f32 81.60525, %v368_v40  ;;  %v671_v60 = vmul.f32 %v655_v16, %v1260_v14 }
 0x103   :  { %v445_v13 = vadd.f32 6.2831855, %v429_v23  ;;  %v446_v22 = vadd.f32 6.2831855, %v430_v24  ;;  %v749_v1 = vadd.f32 -41.3417, %v733_v59  ;;  %v672_v20 = vmul.f32 %v656_v50, %v1265_v37 }
 0x104   :  { %v750_v2 = vadd.f32 -41.3417, %v734_v51  ;;  %v399_v58 = vmul.f32 %v383_v17, %v1243_v3  ;;  %v400_v7 = vmul.f32 %v384_v26, %v1247_v21  ;;  %v687_v52 = vadd.f32 -76.70586, %v671_v60 }
 0x105   :  { %v461_v8 = vmul.f32 %v445_v13, %v1202_v54  ;;  %v462_v45 = vmul.f32 %v446_v22, %v1205_v6  ;;  %v765_v46 = vmul.f32 %v749_v1, %v1227_v56  ;;  %v688_v47 = vadd.f32 -76.70586, %v672_v20 }
 0x106   :  { %v766_v9 = vmul.f32 %v750_v2, %v1231_v48  ;;  %v415_v4 = vadd.f32 -41.3417, %v399_v58  ;;  %v416_v5 = vadd.f32 -41.3417, %v400_v7  ;;  %v703_v28 = vmul.f32 %v687_v52, %v1260_v14 }
 0x107   :  { %477 = vst [vmem:[#allocation2 + $0x40] sm:$0xff] %v461_v8  ;;  %478 = vst [vmem:[#allocation2 + $0x48] sm:$0xff] %v462_v45  ;;  %v781_v42 = vadd.f32 6.2831855, %v765_v46  ;;  %v704_v43 = vmul.f32 %v688_v47, %v1265_v37  ;;  %v162_v27 = vadd.f32 %v1277_v44, %v933_v33  ;;  %v177_v54 = vadd.f32 0.5, %v1288_v12 }
 0x108   :  { %v782_v6 = vadd.f32 6.2831855, %v766_v9  ;;  %v431_v56 = vmul.f32 %v415_v4, %v1243_v3  ;;  %v432_v15 = vmul.f32 %v416_v5, %v1247_v21  ;;  %v719_v48 = vadd.f32 81.60525, %v703_v28 }
 0x109   :  { %v797_v19 = vmul.f32 %v781_v42, %v1221_v18  ;;  %v720_v38 = vadd.f32 81.60525, %v704_v43  ;;  %v178_v41 = vadd.f32 0.5, %v162_v27  ;;  %v193_v55 = vfloor.f32 %v177_v54 }
 0x10a   :  { %v798_v0 = vmul.f32 %v782_v6, %v1223_v61  ;;  %v447_v29 = vadd.f32 6.2831855, %v431_v56  ;;  %v448_v32 = vadd.f32 6.2831855, %v432_v15  ;;  %v735_v25 = vmul.f32 %v719_v48, %v1260_v14 }
 0x10b   :  { %813 = vst [vmem:[#allocation2 + $0xc0] sm:$0xff] %v797_v19  ;;  %v736_v33 = vmul.f32 %v720_v38, %v1265_v37  ;;  %v194_v44 = vfloor.f32 %v178_v41  ;;  %v1324_v3 = vsub.f32 %v1288_v12, %v193_v55  ;;  %v497_v21 = vadd.f32 0.25, %v1288_v12 }
 0x10c   :  { %814 = vst [vmem:[#allocation2 + $0xc8] sm:$0xff] %v798_v0  ;;  %v463_v18 = vmul.f32 %v447_v29, %v1233_v62  ;;  %v464_v36 = vmul.f32 %v448_v32, %v1235_v63  ;;  %v751_v61 = vadd.f32 -41.3417, %v735_v25  ;;  %v498_v39 = vadd.f32 0.25, %v162_v27 }
 0x10d   :  { %v752_v57 = vadd.f32 -41.3417, %v736_v33  ;;  %v1329_v10 = vsub.f32 %v162_v27, %v194_v44  ;;  %v1333_v40 = vmul.f32 %v1324_v3, %v1324_v3  ;;  %v513_v16 = vadd.f32 0.5, %v497_v21 }
 0x10e   :  { %479 = vst [vmem:[#allocation2 + $0x50] sm:$0xff] %v463_v18  ;;  %480 = vst [vmem:[#allocation2 + $0x58] sm:$0xff] %v464_v36  ;;  %v767_v12 = vmul.f32 %v751_v61, %v1260_v14  ;;  %v514_v23 = vadd.f32 0.5, %v498_v39  ;;  %v147_v24 = vmul.f32 %v935_v34, %v120_v11  ;;  %v148_v62 = vmul.f32 %v937_v35, %v120_v11 }
 0x10f   :  { %v768_v63 = vmul.f32 %v752_v57, %v1265_v37  ;;  %v1341_v59 = vmul.f32 %v1329_v10, %v1329_v10  ;;  %v241_v50 = vmul.f32 -0.7181223, %v1333_v40  ;;  %v529_v51 = vfloor.f32 %v513_v16 }
 0x110   :  { %v783_v17 = vadd.f32 6.2831855, %v767_v12  ;;  %v530_v26 = vfloor.f32 %v514_v23  ;;  %v163_v60 = vadd.f32 %v147_v24, %v927_v30  ;;  %v164_v14 = vadd.f32 %v148_v62, %v929_v31 }
 0x111   :  { %v784_v13 = vadd.f32 6.2831855, %v768_v63  ;;  %v242_v34 = vmul.f32 -0.7181223, %v1341_v59  ;;  %v257_v22 = vadd.f32 3.8199525, %v241_v50  ;;  %v1347_v35 = vsub.f32 %v497_v21, %v529_v51 }
 0x112   :  { %v799_v37 = vmul.f32 %v783_v17, %v1249_v49  ;;  %v1350_v1 = vsub.f32 %v498_v39, %v530_v26  ;;  %v179_v20 = vadd.f32 0.5, %v163_v60  ;;  %v180_v2 = vadd.f32 0.5, %v164_v14 }
 0x113   :  { %v800_v58 = vmul.f32 %v784_v13, %v1253_v53  ;;  %v258_v7 = vadd.f32 3.8199525, %v242_v34  ;;  %v273_v52 = vmul.f32 %v257_v22, %v1333_v40  ;;  %v1356_v30 = vmul.f32 %v1347_v35, %v1347_v35 }
 0x114   :  { %815 = vst [vmem:[#allocation2 + $0xd0] sm:$0xff] %v799_v37  ;;  %v1360_v31 = vmul.f32 %v1350_v1, %v1350_v1  ;;  %v195_v8 = vfloor.f32 %v179_v20  ;;  %v196_v49 = vfloor.f32 %v180_v2  ;;  %v499_v45 = vadd.f32 0.25, %v163_v60 }
 0x115   :  { %816 = vst [vmem:[#allocation2 + $0xd8] sm:$0xff] %v800_v58  ;;  %v274_v46 = vmul.f32 %v258_v7, %v1341_v59  ;;  %v289_v47 = vadd.f32 -15.094643, %v273_v52  ;;  %v577_v53 = vmul.f32 -0.7181223, %v1356_v30  ;;  %v500_v9 = vadd.f32 0.25, %v164_v14 }
 0x116   :  { %v578_v4 = vmul.f32 -0.7181223, %v1360_v31  ;;  %v1365_v5 = vsub.f32 %v163_v60, %v195_v8  ;;  %v1367_v28 = vsub.f32 %v164_v14, %v196_v49  ;;  %v515_v42 = vadd.f32 0.5, %v499_v45 }
 0x117   :  { %v290_v43 = vadd.f32 -15.094643, %v274_v46  ;;  %v305_v27 = vmul.f32 %v289_v47, %v1333_v40  ;;  %v593_v54 = vadd.f32 3.8199525, %v577_v53  ;;  %v516_v6 = vadd.f32 0.5, %v500_v9 }
 0x118   :  { %v594_v56 = vadd.f32 3.8199525, %v578_v4  ;;  %v1372_v15 = vmul.f32 %v1365_v5, %v1365_v5  ;;  %v1376_v48 = vmul.f32 %v1367_v28, %v1367_v28  ;;  %v531_v19 = vfloor.f32 %v515_v42 }
 0x119   :  { %v306_v38 = vmul.f32 %v290_v43, %v1341_v59  ;;  %v321_v41 = vadd.f32 42.058693, %v305_v27  ;;  %v609_v55 = vmul.f32 %v593_v54, %v1356_v30  ;;  %v532_v0 = vfloor.f32 %v516_v6 }
 0x11a   :  { %v610_v29 = vmul.f32 %v594_v56, %v1360_v31  ;;  %v243_v32 = vmul.f32 -0.7181223, %v1372_v15  ;;  %v244_v25 = vmul.f32 -0.7181223, %v1376_v48  ;;  %v1383_v33 = vsub.f32 %v499_v45, %v531_v19 }
 0x11b   :  { %v322_v44 = vadd.f32 42.058693, %v306_v38  ;;  %v337_v21 = vmul.f32 %v321_v41, %v1333_v40  ;;  %v625_v11 = vadd.f32 -15.094643, %v609_v55  ;;  %v1386_v18 = vsub.f32 %v500_v9, %v532_v0 }
 0x11c   :  { %v626_v36 = vadd.f32 -15.094643, %v610_v29  ;;  %v259_v61 = vadd.f32 3.8199525, %v243_v32  ;;  %v260_v39 = vadd.f32 3.8199525, %v244_v25  ;;  %v1390_v57 = vmul.f32 %v1383_v33, %v1383_v33 }
 0x11d   :  { %v338_v16 = vmul.f32 %v322_v44, %v1341_v59  ;;  %v353_v12 = vadd.f32 -76.70586, %v337_v21  ;;  %v641_v23 = vmul.f32 %v625_v11, %v1356_v30  ;;  %v1396_v24 = vmul.f32 %v1386_v18, %v1386_v18 }
 0x11e   :  { %v642_v62 = vmul.f32 %v626_v36, %v1360_v31  ;;  %v275_v63 = vmul.f32 %v259_v61, %v1372_v15  ;;  %v276_v50 = vmul.f32 %v260_v39, %v1376_v48  ;;  %v579_v51 = vmul.f32 -0.7181223, %v1390_v57 }
 0x11f   :  { %v354_v17 = vadd.f32 -76.70586, %v338_v16  ;;  %v369_v26 = vmul.f32 %v353_v12, %v1333_v40  ;;  %v657_v60 = vadd.f32 42.058693, %v641_v23  ;;  %v580_v14 = vmul.f32 -0.7181223, %v1396_v24 }
 0x120   :  { %v658_v13 = vadd.f32 42.058693, %v642_v62  ;;  %v291_v34 = vadd.f32 -15.094643, %v275_v63  ;;  %v292_v22 = vadd.f32 -15.094643, %v276_v50 }
 0x121   :  { %v370_v37 = vmul.f32 %v354_v17, %v1341_v59  ;;  %v385_v20 = vadd.f32 81.60525, %v369_v26  ;;  %v673_v2 = vmul.f32 %v657_v60, %v1356_v30  ;;  %v595_v58 = vadd.f32 3.8199525, %v579_v51 }
 0x122   :  { %v674_v7 = vmul.f32 %v658_v13, %v1360_v31  ;;  %v307_v52 = vmul.f32 %v291_v34, %v1372_v15  ;;  %v308_v8 = vmul.f32 %v292_v22, %v1376_v48  ;;  %v596_v49 = vadd.f32 3.8199525, %v580_v14 }
 0x123   :  { %v386_v45 = vadd.f32 81.60525, %v370_v37  ;;  %v401_v46 = vmul.f32 %v385_v20, %v1333_v40  ;;  %v689_v47 = vadd.f32 -76.70586, %v673_v2  ;;  %v611_v53 = vmul.f32 %v595_v58, %v1390_v57 }
 0x124   :  { %v690_v9 = vadd.f32 -76.70586, %v674_v7  ;;  %v323_v4 = vadd.f32 42.058693, %v307_v52  ;;  %v324_v42 = vadd.f32 42.058693, %v308_v8  ;;  %v612_v43 = vmul.f32 %v596_v49, %v1396_v24 }
 0x125   :  { %v402_v27 = vmul.f32 %v386_v45, %v1341_v59  ;;  %v417_v54 = vadd.f32 -41.3417, %v401_v46  ;;  %v705_v6 = vmul.f32 %v689_v47, %v1356_v30  ;;  %v627_v56 = vadd.f32 -15.094643, %v611_v53 }
 0x126   :  { %v706_v19 = vmul.f32 %v690_v9, %v1360_v31  ;;  %v339_v38 = vmul.f32 %v323_v4, %v1372_v15  ;;  %v340_v41 = vmul.f32 %v324_v42, %v1376_v48  ;;  %v628_v55 = vadd.f32 -15.094643, %v612_v43 }
 0x127   :  { %v418_v0 = vadd.f32 -41.3417, %v402_v27  ;;  %v433_v29 = vmul.f32 %v417_v54, %v1333_v40  ;;  %v721_v32 = vadd.f32 81.60525, %v705_v6  ;;  %v643_v25 = vmul.f32 %v627_v56, %v1390_v57 }
 0x128   :  { %v722_v44 = vadd.f32 81.60525, %v706_v19  ;;  %v355_v21 = vadd.f32 -76.70586, %v339_v38  ;;  %v356_v11 = vadd.f32 -76.70586, %v340_v41  ;;  %v644_v36 = vmul.f32 %v628_v55, %v1396_v24 }
 0x129   :  { %v434_v61 = vmul.f32 %v418_v0, %v1341_v59  ;;  %v449_v39 = vadd.f32 6.2831855, %v433_v29  ;;  %v737_v16 = vmul.f32 %v721_v32, %v1356_v30  ;;  %v659_v12 = vadd.f32 42.058693, %v643_v25 }
 0x12a   :  { %v738_v23 = vmul.f32 %v722_v44, %v1360_v31  ;;  %v371_v62 = vmul.f32 %v355_v21, %v1372_v15  ;;  %v372_v40 = vmul.f32 %v356_v11, %v1376_v48  ;;  %v660_v63 = vadd.f32 42.058693, %v644_v36 }
 0x12b   :  { %v450_v50 = vadd.f32 6.2831855, %v434_v61  ;;  %v465_v51 = vmul.f32 %v449_v39, %v1324_v3  ;;  %v753_v17 = vadd.f32 -41.3417, %v737_v16  ;;  %v675_v26 = vmul.f32 %v659_v12, %v1390_v57 }
 0x12c   :  { %v754_v60 = vadd.f32 -41.3417, %v738_v23  ;;  %v387_v14 = vadd.f32 81.60525, %v371_v62  ;;  %v388_v59 = vadd.f32 81.60525, %v372_v40  ;;  %v676_v13 = vmul.f32 %v660_v63, %v1396_v24 }
 0x12d   :  { %v466_v34 = vmul.f32 %v450_v50, %v1329_v10  ;;  %481 = vst [vmem:[#allocation2 + $0x60] sm:$0xff] %v465_v51  ;;  %v769_v22 = vmul.f32 %v753_v17, %v1356_v30  ;;  %v691_v37 = vadd.f32 -76.70586, %v675_v26 }
 0x12e   :  { %v770_v20 = vmul.f32 %v754_v60, %v1360_v31  ;;  %v403_v2 = vmul.f32 %v387_v14, %v1372_v15  ;;  %v404_v3 = vmul.f32 %v388_v59, %v1376_v48  ;;  %v692_v58 = vadd.f32 -76.70586, %v676_v13 }
 0x12f   :  { %482 = vst [vmem:[#allocation2 + $0x68] sm:$0xff] %v466_v34  ;;  %v785_v7 = vadd.f32 6.2831855, %v769_v22  ;;  %v707_v52 = vmul.f32 %v691_v37, %v1390_v57 }
 0x130   :  { %v786_v8 = vadd.f32 6.2831855, %v770_v20  ;;  %v419_v49 = vadd.f32 -41.3417, %v403_v2  ;;  %v420_v45 = vadd.f32 -41.3417, %v404_v3  ;;  %v708_v10 = vmul.f32 %v692_v58, %v1396_v24 }
 0x131   :  { %v801_v46 = vmul.f32 %v785_v7, %v1347_v35  ;;  %v723_v30 = vadd.f32 81.60525, %v707_v52 }
 0x132   :  { %v802_v47 = vmul.f32 %v786_v8, %v1350_v1  ;;  %v435_v31 = vmul.f32 %v419_v49, %v1372_v15  ;;  %v436_v53 = vmul.f32 %v420_v45, %v1376_v48  ;;  %v724_v9 = vadd.f32 81.60525, %v708_v10 }
 0x133   :  { %817 = vst [vmem:[#allocation2 + $0xe0] sm:$0xff] %v801_v46  ;;  %v739_v4 = vmul.f32 %v723_v30, %v1390_v57 }
 0x134   :  { %818 = vst [vmem:[#allocation2 + $0xe8] sm:$0xff] %v802_v47  ;;  %v451_v42 = vadd.f32 6.2831855, %v435_v31  ;;  %v452_v43 = vadd.f32 6.2831855, %v436_v53  ;;  %v740_v27 = vmul.f32 %v724_v9, %v1396_v24 }
 0x135   :  { %v755_v54 = vadd.f32 -41.3417, %v739_v4 }
 0x136   :  { %v467_v6 = vmul.f32 %v451_v42, %v1365_v5  ;;  %v468_v35 = vmul.f32 %v452_v43, %v1367_v28  ;;  %v756_v56 = vadd.f32 -41.3417, %v740_v27 }
 0x137   :  { %v771_v1 = vmul.f32 %v755_v54, %v1390_v57 }
 0x138   :  { %483 = vst [vmem:[#allocation2 + $0x70] sm:$0xff] %v467_v6  ;;  %484 = vst [vmem:[#allocation2 + $0x78] sm:$0xff] %v468_v35  ;;  %v772_v15 = vmul.f32 %v756_v56, %v1396_v24 }
 0x139   :  { %v787_v48 = vadd.f32 6.2831855, %v771_v1 }
 0x13a   :  { %v788_v19 = vadd.f32 6.2831855, %v772_v15 }
 0x13b   :  { %v803_v38 = vmul.f32 %v787_v48, %v1383_v33 }
 0x13c   :  { %v804_v41 = vmul.f32 %v788_v19, %v1386_v18 }
 0x13d   :  { %819 = vst [vmem:[#allocation2 + $0xf0] sm:$0xff] %v803_v38 }
 0x13e   :  { %820 = vst [vmem:[#allocation2 + $0xf8] sm:$0xff] %v804_v41 }
 0x13f   :  { %858 = shalt.err (!%p855_p4)
}
 0x140   :  { %s872_s30 = smov 256   ;;  %s873_s3 = smov 16  }
 0x141   :  { %832 = dma.vmem_to_hbm [thread:$0]  %s827_s28, 4096, %s1452_s2, [#allocation3], %s872_s30, %s872_s30, %s873_s3  }
 0x142   :  { %867 = dma.done.wait [#allocation3], 4096  }
 0x143   :  { %868 = vsyncadd [#allocation3], 4294963200 }
 0x144   :  { %836 = vsyncpa [#allocation3], 1 }

</bundles_post_ra>
